<compile_context>
chip_gen: v7x
topology: tpu7x:2x2x1
jax: 0.10.0
libtpu: 0.0.40
codegen_flags: <defaults>
</compile_context>

<pallas_src>
import functools

import jax
import jax.numpy as jnp
from jax.experimental import pallas as pl
from jax.experimental.pallas import tpu as pltpu


_NUM_CLASSES = 2
_PAD_N = 128          # lane-dense output width for the 2-class projection


def _round_up(x, m):
    return -(-x // m) * m


def _choose_tk(k_dim):
    """K-tile for the W1a reduction: keep it whole when small, else the largest
    128-multiple divisor <= 1024 (so weight slabs stream through VMEM)."""
    if k_dim <= 1024:
        return k_dim
    for tk in (1024, 512, 256, 128):
        if k_dim % tk == 0:
            return tk
    return k_dim          # odd hidden size: keep the whole K resident


@functools.lru_cache(maxsize=None)
def _vmem_limit_bytes():
    """Generation-aware VMEM budget (~112 MiB on v5e/v6e, ~56 MiB on v7x)."""
    try:
        cap = pltpu.get_tpu_info().vmem_capacity_bytes
    except Exception:
        cap = 64 * 1024 * 1024
    return int(cap - cap // 8)


def classification_head_kernel(cls_ref, flow_ref, w1a_ref, w1b_ref, b1_ref,
                               w2_ref, b2_ref, out_ref, acc_ref):
    k = pl.program_id(1)

    # First K step: seed the accumulator with the flowgnn half of the
    # (virtually) concatenated input:  [cls | flow] @ W1 = cls @ W1a + flow @ W1b.
    @pl.when(k == 0)
    def _():
        acc_ref[...] = jnp.dot(flow_ref[...].astype(jnp.bfloat16), w1b_ref[...],
                               preferred_element_type=jnp.float32)

    # Every K step: accumulate this K-slab of cls @ W1a (f32 accumulation).
    acc_ref[...] += jnp.dot(cls_ref[...].astype(jnp.bfloat16), w1a_ref[...],
                            preferred_element_type=jnp.float32)

    # Last K step: bias + tanh in f32 (v5e has no bf16 VPU/EUP), then the
    # 2-wide out_proj padded to 128 lanes for an unmasked lane-dense store.
    @pl.when(k == pl.num_programs(1) - 1)
    def _():
        h = jnp.tanh(acc_ref[...] + b1_ref[...])
        logits = jnp.dot(h.astype(w2_ref.dtype), w2_ref[...],
                         preferred_element_type=jnp.float32)
        out_ref[...] = (logits + b2_ref[...]).astype(out_ref.dtype)


def prepare_params(params):
    """One-time weight prep (bf16 cast + 128-lane pad of out_proj).

    Hoisted out of the per-call forward so the f32 read + bf16 write of W1
    (~96 MiB HBM traffic at H=4096) is not paid on every call.
    """
    H = params["w1a"].shape[1]
    w2 = jnp.zeros((H, _PAD_N), jnp.bfloat16).at[:, :_NUM_CLASSES].set(
        params["w2"].astype(jnp.bfloat16))
    b2 = jnp.zeros((1, _PAD_N), jnp.float32).at[:, :_NUM_CLASSES].set(
        params["b2"].astype(jnp.float32))
    return {
        "w1a": params["w1a"].astype(jnp.bfloat16),              # (H, H)
        "w1b": params["w1b"].astype(jnp.bfloat16),              # (E, H)
        "b1": params["b1"].astype(jnp.float32).reshape(1, -1),  # (1, H)
        "w2": w2,                                               # (H, 128)
        "b2": b2,                                               # (1, 128)
    }


@functools.partial(jax.jit, static_argnames=("tm",))
def classification_head_forward(features, flowgnn_embed, prepared, tm=256):
    """Pallas forward for ClassificationHead.  Returns (B, 2) f32 logits."""
    B = features.shape[0]
    K = prepared["w1a"].shape[0]        # contraction dim of W1a (== hidden)
    H = prepared["w1a"].shape[1]        # dense output dim       (== hidden)
    E = prepared["w1b"].shape[0]

    # Only the CLS row leaves HBM for the kernel; dropout is identity in eval.
    cls = features[:, 0, :]             # (B, K) f32, bf16 cast happens in-kernel
    flow = flowgnn_embed                # (B, E) f32

    # --- batch tiling -------------------------------------------------------
    if B <= 8:
        tm, Bp = B, B                   # full-extent block, no padding
    else:
        tm = _round_up(max(tm, 16), 16)             # guard user-passed tm
        Bp = _round_up(B, 16)
        if Bp >= 32:
            # >= 2 batch tiles so the "parallel" axis shards across v7x's 2 TCs.
            tm = min(tm, _round_up(pl.cdiv(Bp, 2), 16))
        else:
            tm = Bp
        Bp = _round_up(Bp, tm)
    if Bp != B:
        cls = jnp.pad(cls, ((0, Bp - B), (0, 0)))
        flow = jnp.pad(flow, ((0, Bp - B), (0, 0)))

    tk = _choose_tk(K)
    nb, nk = Bp // tm, K // tk

    resident = dict(pipeline_mode=pl.Buffered(1))   # no double-buffer for weights
    const = lambda i, k: (0, 0)

    out = pl.pallas_call(
        classification_head_kernel,
        out_shape=jax.ShapeDtypeStruct((Bp, _PAD_N), jnp.bfloat16),
        grid_spec=pltpu.PrefetchScalarGridSpec(
            num_scalar_prefetch=0,
            grid=(nb, nk),                                   # (batch, K-reduction)
            in_specs=[
                pl.BlockSpec((tm, tk), lambda i, k: (i, k)),   # CLS rows (f32)
                pl.BlockSpec((tm, E), lambda i, k: (i, 0)),    # flowgnn embed (f32)
                pl.BlockSpec((tk, H), lambda i, k: (k, 0)),    # W1a K-slab (bf16)
                pl.BlockSpec((E, H), const, **resident),       # W1b (resident)
                pl.BlockSpec((1, H), const, **resident),       # b1
                pl.BlockSpec((H, _PAD_N), const, **resident),  # W2 (padded)
                pl.BlockSpec((1, _PAD_N), const, **resident),  # b2 (padded)
            ],
            out_specs=pl.BlockSpec((tm, _PAD_N), lambda i, k: (i, 0)),
            scratch_shapes=[pltpu.VMEM((tm, H), jnp.float32)],  # f32 accumulator
        ),
        compiler_params=pltpu.CompilerParams(
            dimension_semantics=("parallel", "arbitrary"),
            vmem_limit_bytes=_vmem_limit_bytes(),
        ),
    )(cls, flow, prepared["w1a"], prepared["w1b"], prepared["b1"],
      prepared["w2"], prepared["b2"])

    return out[:B, :_NUM_CLASSES].astype(jnp.float32)


def make_params(key, hidden_size, extra_dim):
    """Deterministic synthetic weights for ClassificationHead."""
    k1, k2, k3, k4 = jax.random.split(key, 4)
    in_dim = hidden_size + extra_dim
    s1 = 1.0 / jnp.sqrt(in_dim)
    s2 = 1.0 / jnp.sqrt(hidden_size)
    # dense: Linear(hidden+extra, hidden) stored (in, out); split rows for the
    # [CLS | flowgnn] halves of the concatenated input.
    w1 = jax.random.uniform(k1, (in_dim, hidden_size), jnp.float32, -s1, s1)
    b1 = jax.random.uniform(k2, (1, hidden_size), jnp.float32, -s1, s1)
    # out_proj: Linear(hidden, 2)
    w2 = jax.random.uniform(k3, (hidden_size, _NUM_CLASSES), jnp.float32, -s2, s2)
    b2 = jax.random.uniform(k4, (1, _NUM_CLASSES), jnp.float32, -s2, s2)
    return {
        "w1a": w1[:hidden_size, :],      # multiplies the CLS features (B, H)
        "w1b": w1[hidden_size:, :],      # multiplies flowgnn_embed    (B, E)
        "b1": b1,
        "w2": w2,
        "b2": b2,
    }


if __name__ == "__main__":
    B, S, H, E = 2, 8, 32, 16   # batch, seq, hidden_size, flowgnn out_dim

    key = jax.random.PRNGKey(0)
    kf, kg, kp = jax.random.split(key, 3)

    features = jax.random.normal(kf, (B, S, H), jnp.float32)
    flowgnn_embed = jax.random.normal(kg, (B, E), jnp.float32)
    params = make_params(kp, H, E)
    prepared = prepare_params(params)           # one-time weight cast / pad

    logits = classification_head_forward(features, flowgnn_embed, prepared)
    jax.block_until_ready(logits)
    assert logits.shape == (B, _NUM_CLASSES)

    # pure-JAX reference with the same bf16 operand rounding
    cls_r = features[:, 0, :].astype(jnp.bfloat16).astype(jnp.float32)
    flow_r = flowgnn_embed.astype(jnp.bfloat16).astype(jnp.float32)
    w1a_r = params["w1a"].astype(jnp.bfloat16).astype(jnp.float32)
    w1b_r = params["w1b"].astype(jnp.bfloat16).astype(jnp.float32)
    h_r = jnp.tanh(cls_r @ w1a_r + flow_r @ w1b_r + params["b1"])
    h_r = h_r.astype(jnp.bfloat16).astype(jnp.float32)
    w2_r = params["w2"].astype(jnp.bfloat16).astype(jnp.float32)
    ref = h_r @ w2_r + params["b2"]

    assert jnp.allclose(logits, ref, atol=2e-2, rtol=2e-2), (logits, ref)
    print("KERNEL_OK")
</pallas_src>

<mosaic_0001>
module attributes {stable_mosaic.version = 11 : i64} {
  func.func @classification_head_kernel(%arg0: i32, %arg1: i32, %arg2: memref<2x32xf32, #tpu.memory_space<vmem>>, %arg3: memref<2x16xf32, #tpu.memory_space<vmem>>, %arg4: memref<32x32xbf16, #tpu.memory_space<vmem>>, %arg5: memref<16x32xbf16, #tpu.memory_space<vmem>>, %arg6: memref<1x32xf32, #tpu.memory_space<vmem>>, %arg7: memref<32x128xbf16, #tpu.memory_space<vmem>>, %arg8: memref<1x128xf32, #tpu.memory_space<vmem>>, %arg9: memref<2x128xbf16, #tpu.memory_space<vmem>>, %arg10: memref<2x32xf32, #tpu.memory_space<vmem>>) attributes {dimension_semantics = [#tpu.dimension_semantics<parallel>, #tpu.dimension_semantics<arbitrary>], iteration_bounds = array<i64: 1, 1>, scalar_prefetch = 0 : i64, scratch_operands = 1 : i64, tpu.core_type = #tpu.core_type<tc>, window_params = [{transform_indices = @transform_0, window_bounds = array<i64: 2, 32>}, {transform_indices = @transform_1, window_bounds = array<i64: 2, 16>}, {transform_indices = @transform_2, window_bounds = array<i64: 32, 32>}, {pipeline_mode = #tpu.pipeline_mode<synchronous>, transform_indices = @transform_3, window_bounds = array<i64: 16, 32>}, {pipeline_mode = #tpu.pipeline_mode<synchronous>, transform_indices = @transform_4, window_bounds = array<i64: 1, 32>}, {pipeline_mode = #tpu.pipeline_mode<synchronous>, transform_indices = @transform_5, window_bounds = array<i64: 32, 128>}, {pipeline_mode = #tpu.pipeline_mode<synchronous>, transform_indices = @transform_6, window_bounds = array<i64: 1, 128>}, {transform_indices = @transform_7, window_bounds = array<i64: 2, 128>}]} {
    %c0_i32 = arith.constant 0 : i32
    %0 = arith.cmpi eq, %arg1, %c0_i32 : i32
    %1 = arith.extui %0 : i1 to i32
    %c0_i32_0 = arith.constant 0 : i32
    %2 = arith.cmpi ne, %1, %c0_i32_0 : i32
    scf.if %2 {
      %c0_10 = arith.constant 0 : index
      %c0_11 = arith.constant 0 : index
      %13 = vector.load %arg3[%c0_10, %c0_11] : memref<2x16xf32, #tpu.memory_space<vmem>>, vector<2x16xf32>
      %14 = arith.truncf %13 : vector<2x16xf32> to vector<2x16xbf16>
      %c0_12 = arith.constant 0 : index
      %c0_13 = arith.constant 0 : index
      %15 = vector.load %arg5[%c0_12, %c0_13] : memref<16x32xbf16, #tpu.memory_space<vmem>>, vector<16x32xbf16>
      %cst_14 = arith.constant dense<0.000000e+00> : vector<2x32xf32>
      %16 = tpu.matmul %14, %15, %cst_14 {dimension_numbers = #tpu.dot_dimension_numbers<[1], [0], [0], [1], [0, 0, 1, 1], [], []>} : vector<2x16xbf16>, vector<16x32xbf16>, vector<2x32xf32> -> vector<2x32xf32>
      %c0_15 = arith.constant 0 : index
      %c0_16 = arith.constant 0 : index
      %17 = vector.load %arg10[%c0_15, %c0_16] : memref<2x32xf32, #tpu.memory_space<vmem>>, vector<2x32xf32>
      tpu.vector_store %arg10[%c0_15, %c0_16], %16 {strides = array<i32>} : memref<2x32xf32, #tpu.memory_space<vmem>>, vector<2x32xf32>,
    } else {
    }
    %c0 = arith.constant 0 : index
    %c0_1 = arith.constant 0 : index
    %3 = vector.load %arg10[%c0, %c0_1] : memref<2x32xf32, #tpu.memory_space<vmem>>, vector<2x32xf32>
    %c0_2 = arith.constant 0 : index
    %c0_3 = arith.constant 0 : index
    %4 = vector.load %arg2[%c0_2, %c0_3] : memref<2x32xf32, #tpu.memory_space<vmem>>, vector<2x32xf32>
    %5 = arith.truncf %4 : vector<2x32xf32> to vector<2x32xbf16>
    %c0_4 = arith.constant 0 : index
    %c0_5 = arith.constant 0 : index
    %6 = vector.load %arg4[%c0_4, %c0_5] : memref<32x32xbf16, #tpu.memory_space<vmem>>, vector<32x32xbf16>
    %cst = arith.constant dense<0.000000e+00> : vector<2x32xf32>
    %7 = tpu.matmul %5, %6, %cst {dimension_numbers = #tpu.dot_dimension_numbers<[1], [0], [0], [1], [0, 0, 1, 1], [], []>} : vector<2x32xbf16>, vector<32x32xbf16>, vector<2x32xf32> -> vector<2x32xf32>
    %8 = arith.addf %3, %7 : vector<2x32xf32>
    %c0_6 = arith.constant 0 : index
    %c0_7 = arith.constant 0 : index
    %9 = vector.load %arg10[%c0_6, %c0_7] : memref<2x32xf32, #tpu.memory_space<vmem>>, vector<2x32xf32>
    tpu.vector_store %arg10[%c0_6, %c0_7], %8 {strides = array<i32>} : memref<2x32xf32, #tpu.memory_space<vmem>>, vector<2x32xf32>,
    %c0_i32_8 = arith.constant 0 : i32
    %10 = arith.cmpi eq, %arg1, %c0_i32_8 : i32
    %11 = arith.extui %10 : i1 to i32
    %c0_i32_9 = arith.constant 0 : i32
    %12 = arith.cmpi ne, %11, %c0_i32_9 : i32
    scf.if %12 {
      %c0_10 = arith.constant 0 : index
      %c0_11 = arith.constant 0 : index
      %13 = vector.load %arg10[%c0_10, %c0_11] : memref<2x32xf32, #tpu.memory_space<vmem>>, vector<2x32xf32>
      %c0_12 = arith.constant 0 : index
      %c0_13 = arith.constant 0 : index
      %14 = vector.load %arg6[%c0_12, %c0_13] : memref<1x32xf32, #tpu.memory_space<vmem>>, vector<1x32xf32>
      %15 = vector.broadcast %14 : vector<1x32xf32> to vector<2x32xf32>
      %16 = arith.addf %13, %15 : vector<2x32xf32>
      %17 = math.tanh %16 : vector<2x32xf32>
      %18 = arith.truncf %17 : vector<2x32xf32> to vector<2x32xbf16>
      %c0_14 = arith.constant 0 : index
      %c0_15 = arith.constant 0 : index
      %19 = vector.load %arg7[%c0_14, %c0_15] : memref<32x128xbf16, #tpu.memory_space<vmem>>, vector<32x128xbf16>
      %cst_16 = arith.constant dense<0.000000e+00> : vector<2x128xf32>
      %20 = tpu.matmul %18, %19, %cst_16 {dimension_numbers = #tpu.dot_dimension_numbers<[1], [0], [0], [1], [0, 0, 1, 1], [], []>} : vector<2x32xbf16>, vector<32x128xbf16>, vector<2x128xf32> -> vector<2x128xf32>
      %c0_17 = arith.constant 0 : index
      %c0_18 = arith.constant 0 : index
      %21 = vector.load %arg8[%c0_17, %c0_18] : memref<1x128xf32, #tpu.memory_space<vmem>>, vector<1x128xf32>
      %22 = vector.broadcast %21 : vector<1x128xf32> to vector<2x128xf32>
      %23 = arith.addf %20, %22 : vector<2x128xf32>
      %24 = arith.truncf %23 : vector<2x128xf32> to vector<2x128xbf16>
      %c0_19 = arith.constant 0 : index
      %c0_20 = arith.constant 0 : index
      %25 = vector.load %arg9[%c0_19, %c0_20] : memref<2x128xbf16, #tpu.memory_space<vmem>>, vector<2x128xbf16>
      tpu.vector_store %arg9[%c0_19, %c0_20], %24 {strides = array<i32>} : memref<2x128xbf16, #tpu.memory_space<vmem>>, vector<2x128xbf16>,
    } else {
    }
    return
  }
  func.func @transform_0(%arg0: i32, %arg1: i32) -> (i32, i32) {
    %c0_i32 = arith.constant 0 : i32
    return %arg0, %arg1 : i32, i32
  }
  func.func @transform_1(%arg0: i32, %arg1: i32) -> (i32, i32) {
    %c0_i32 = arith.constant 0 : i32
    %c0_i32_0 = arith.constant 0 : i32
    return %arg0, %c0_i32 : i32, i32
  }
  func.func @transform_2(%arg0: i32, %arg1: i32) -> (i32, i32) {
    %c0_i32 = arith.constant 0 : i32
    %c0_i32_0 = arith.constant 0 : i32
    return %arg1, %c0_i32 : i32, i32
  }
  func.func @transform_3(%arg0: i32, %arg1: i32) -> (i32, i32) {
    %c0_i32 = arith.constant 0 : i32
    %c0_i32_0 = arith.constant 0 : i32
    %c0_i32_1 = arith.constant 0 : i32
    return %c0_i32, %c0_i32_0 : i32, i32
  }
  func.func @transform_4(%arg0: i32, %arg1: i32) -> (i32, i32) {
    %c0_i32 = arith.constant 0 : i32
    %c0_i32_0 = arith.constant 0 : i32
    %c0_i32_1 = arith.constant 0 : i32
    return %c0_i32, %c0_i32_0 : i32, i32
  }
  func.func @transform_5(%arg0: i32, %arg1: i32) -> (i32, i32) {
    %c0_i32 = arith.constant 0 : i32
    %c0_i32_0 = arith.constant 0 : i32
    %c0_i32_1 = arith.constant 0 : i32
    return %c0_i32, %c0_i32_0 : i32, i32
  }
  func.func @transform_6(%arg0: i32, %arg1: i32) -> (i32, i32) {
    %c0_i32 = arith.constant 0 : i32
    %c0_i32_0 = arith.constant 0 : i32
    %c0_i32_1 = arith.constant 0 : i32
    return %c0_i32, %c0_i32_0 : i32, i32
  }
  func.func @transform_7(%arg0: i32, %arg1: i32) -> (i32, i32) {
    %c0_i32 = arith.constant 0 : i32
    %c0_i32_0 = arith.constant 0 : i32
    return %arg0, %c0_i32 : i32, i32
  }
}

</mosaic_0001>

<bundles_post_ra>
// kernel: classification_head_forward.1
= control target key start
LH: loop header
LB: loop body
LE: loop exit
PB: predicated region body
PF: predicated region fallthrough
CT: control target
= control target key end

     0   :  { %12 = vsyncpa [#allocation4], 0  ;;  %s556_s0 = inlined_call_operand.vmem [shape: f32[2,32], index: 0, kind: input, shape index: {}]   ;;  %s557_s1 = inlined_call_operand.hbm [shape: f32[2,16], index: 1, kind: input, shape index: {}]   ;;  %s558_s2 = inlined_call_operand.vmem [shape: bf16[32,32], index: 2, kind: input, shape index: {}]   ;;  %s559_s3 = inlined_call_operand.vmem [shape: bf16[16,32], index: 3, kind: input, shape index: {}]   ;;  %s560_s4 = inlined_call_operand.hbm [shape: f32[1,32], index: 4, kind: input, shape index: {}]   ;;  %s561_s5 = inlined_call_operand.hbm [shape: bf16[32,128], index: 5, kind: input, shape index: {}]   ;;  %s562_s6 = inlined_call_operand.hbm [shape: f32[1,128], index: 6, kind: input, shape index: {}]   ;;  %s563_s7 = inlined_call_operand.vmem [shape: bf16[2,128], index: 7, kind: output, shape index: {}]  }
   0x1   :  { %13 = vsyncpa [#allocation6], 0 }
   0x2   :  { %14 = vsyncpa [#allocation9], 0  ;;  %s440_s24 = smov [#allocation5]   ;;  %s441_s26 = smov [#allocation3]  }
   0x3   :  { %s37_s25 = sshll.u32 %s440_s24, 4  ;;  %s23_s27 = sshll.u32 %s441_s26, 4  ;;  %s38_s25 = int_to_ptr.vmem [resolvable:$true] %s37_s25  ;;  %s24_s27 = int_to_ptr.vmem [resolvable:$true] %s23_s27 }
   0x4   :  { %s346_s30 = scalar_lea.hbm %s560_s4, 16 }
   0x5   :  { %p347_p0 = scmp.ne.s32.totalorder %s560_s4, %s346_s30  ;;  %p350_p1 = scmp.lt.u32.totalorder %s346_s30, %s560_s4 }
   0x7   :  { %p352_p2 = pnand %p350_p1, %p347_p0 }
   0x9   :  { %355 = shalt.err (!%p352_p2)
}
   0xa   :  { %s356_s12 = scalar_lea.vmem %s38_s25, 16  ;;  %s360_s13 = scalar_lea.vmem %s38_s25, 32 }
   0xb   :  { %p357_p3 = scmp.ne.s32.totalorder %s38_s25, %s356_s12  ;;  %p361_p4 = scmp.lt.s32.totalorder %s38_s25, %s38_s25 }
   0xc   :  { %p362_p5 = scmp.lt.s32.totalorder %s360_s13, %s356_s12 }
   0xe   :  { %p363_p6 = por %p362_p5, %p361_p4 }
  0x10   :  { %p364_p7 = pnand %p363_p6, %p357_p3 }
  0x12   :  { %367 = shalt.err (!%p364_p7)
}
  0x13   :  { %40 = dma.hbm_to_vmem [thread:$0]  %s560_s4, 16, %s38_s25, [#allocation6]  }
  0x14   :  { %s368_s18 = scalar_lea.hbm %s557_s1, 32 }
  0x15   :  { %p369_p8 = scmp.ne.s32.totalorder %s557_s1, %s368_s18  ;;  %p372_p9 = scmp.lt.u32.totalorder %s368_s18, %s557_s1 }
  0x17   :  { %p374_p10 = pnand %p372_p9, %p369_p8 }
  0x19   :  { %377 = shalt.err (!%p374_p10)
}
  0x1a   :  { %s378_s23 = scalar_lea.vmem %s24_s27, 32  ;;  %p383_p12 = scmp.lt.s32.totalorder %s24_s27, %s24_s27 }
  0x1b   :  { %p379_p11 = scmp.ne.s32.totalorder %s24_s27, %s378_s23  ;;  %p384_p13 = scmp.lt.s32.totalorder %s378_s23, %s378_s23 }
  0x1d   :  { %p385_p0 = por %p384_p13, %p383_p12 }
  0x1f   :  { %p386_p1 = pnand %p385_p0, %p379_p11 }
  0x21   :  { %389 = shalt.err (!%p386_p1)
}
  0x22   :  { %26 = dma.hbm_to_vmem [thread:$0]  %s557_s1, 32, %s24_s27, [#allocation4]  }
  0x23   :  { %s442_s25 = smov [#allocation7]   ;;  %s390_s30 = scalar_lea.hbm %s561_s5, 256 }
  0x24   :  { %s46_s26 = sshll.u32 %s442_s25, 4  ;;  %p391_p2 = scmp.ne.s32.totalorder %s561_s5, %s390_s30  ;;  %s47_s26 = int_to_ptr.vmem [resolvable:$true] %s46_s26 }
  0x25   :  { %p394_p3 = scmp.lt.u32.totalorder %s390_s30, %s561_s5 }
  0x27   :  { %p396_p4 = pnand %p394_p3, %p391_p2 }
  0x29   :  { %399 = shalt.err (!%p396_p4)
}
  0x2a   :  { %s400_s12 = scalar_lea.vmem %s47_s26, 256  ;;  %p405_p6 = scmp.lt.s32.totalorder %s47_s26, %s47_s26 }
  0x2b   :  { %p401_p5 = scmp.ne.s32.totalorder %s47_s26, %s400_s12  ;;  %p406_p7 = scmp.lt.s32.totalorder %s400_s12, %s400_s12 }
  0x2d   :  { %p407_p8 = por %p406_p7, %p405_p6 }
  0x2f   :  { %p408_p9 = pnand %p407_p8, %p401_p5 }
  0x31   :  { %411 = shalt.err (!%p408_p9)
}
  0x32   :  { %s443_s1 = smov 64   ;;  %s444_s27 = smov 4  }
  0x33   :  { %52 = dma.hbm_to_vmem [thread:$0]  %s561_s5, 256, %s47_s26, [#allocation6], %s443_s1, %s443_s1, %s444_s27  }
  0x34   :  { %s445_s15 = smov [#allocation8]   ;;  %s412_s19 = scalar_lea.hbm %s562_s6, 16 }
  0x35   :  { %s59_s16 = sshll.u32 %s445_s15, 4  ;;  %p413_p10 = scmp.ne.s32.totalorder %s562_s6, %s412_s19  ;;  %s60_s16 = int_to_ptr.vmem [resolvable:$true] %s59_s16 }
  0x36   :  { %p416_p11 = scmp.lt.u32.totalorder %s412_s19, %s562_s6 }
  0x38   :  { %p418_p12 = pnand %p416_p11, %p413_p10 }
  0x3a   :  { %421 = shalt.err (!%p418_p12)
}
  0x3b   :  { %s422_s4 = scalar_lea.vmem %s60_s16, 16  ;;  %s426_s5 = scalar_lea.vmem %s60_s16, 32 }
  0x3c   :  { %p423_p13 = scmp.ne.s32.totalorder %s60_s16, %s422_s4  ;;  %p427_p0 = scmp.lt.s32.totalorder %s60_s16, %s60_s16 }
  0x3d   :  { %p428_p1 = scmp.lt.s32.totalorder %s426_s5, %s422_s4 }
  0x3f   :  { %p429_p2 = por %p428_p1, %p427_p0 }
  0x41   :  { %p430_p3 = pnand %p429_p2, %p423_p13 }
  0x43   :  { %433 = shalt.err (!%p430_p3)
}
  0x44   :  { %62 = dma.hbm_to_vmem [thread:$0]  %s562_s6, 16, %s60_s16, [#allocation9]  }
  0x45   :  { %434 = dma.done.wait [#allocation4], 32  }
  0x46   :  { %435 = vsyncadd [#allocation4], 4294967264 }
  0x47   :  { %436 = dma.done.wait [#allocation6], 272  }
  0x48   :  { %437 = vsyncadd [#allocation6], 4294967024 }
  0x49   :  { %438 = dma.done.wait [#allocation9], 16  }
  0x4a   :  { %439 = vsyncadd [#allocation9], 4294967280  ;;  %v446_v0 = vmov 0.0   ;;  %vm447_vm0 = vmmov 0   ;;  %v339_v1 = vld [vmem:[%s559_s3] sm:$0xff]   ;;  %vm90_vm1 = vcmask 130048  }
  0x4b   :  { %309 = vmatprep.subr.bf16.mxu0 %v446_v0  ;;  %315 = vmatprep.subr.bf16.mxu1 %v446_v0  ;;  %v340_v2 = vld [vmem:[%s558_s2] sm:$0xff]   ;;  %v341_v5 = vld [vmem:[%s558_s2 + $0x8] sm:$0xff]   ;;  %vm155_vm2 = vcmask 261120   ;;  %vm134_vm3 = vcmask 254976   ;;  %v297_v25 = vld [vmem:[#allocation8] ss:$0 sm:$0xff] }
  0x4c   :  { %311 = vmatprep.mubr.msk.bf16.mxu0 %vm447_vm0, %v446_v0  ;;  %319 = vmatprep.mubr.msk.bf16.mxu1 %vm447_vm0, %v446_v0  ;;  %v80_v3 = vld [vmem:[#allocation3] sm:$0x3]  ;;  %v137_v6 = vld [vmem:[%s556_s0] sm:$0x3]  ;;  %v342_v8 = vld [vmem:[#allocation7] sm:$0xff]  }
  0x4d   :  { %310 = vmatpush3.bf16.msra.mxu0 %v339_v1  ;;  %316 = vmatpush3.bf16.msra.mxu1 %v340_v2  ;;  %v81_v4 = vpack.c.bf16 %v80_v3, %v80_v3  ;;  %v138_v7 = vpack.c.bf16 %v137_v6, %v137_v6  ;;  %v343_v9 = vld [vmem:[#allocation7 + $0x8] sm:$0xff]   ;;  %v296_v20 = vld [vmem:[#allocation5] ss:$0 sm:$0xff] }
  0x4e   :  { %323 = vmatprep.subr.bf16.mxu0 %v446_v0  ;;  %317 = vmatprep.subr.bf16.mxu1 %v446_v0 }
  0x50   :  { %312 = vmatmul.mubr.msk.bf16.vlgmr.msra.gmra.mrb[0].mxu0 %vm90_vm1, %v81_v4 }
  0x51   :  { %327 = vmatprep.mubr.msk.bf16.mxu0 %vm447_vm0, %v446_v0  ;;  %318 = vmatpush3.bf16.msra.mxu1 %v341_v5 }
  0x52   :  { %324 = vmatpush3.bf16.msra.mxu0 %v342_v8 }
  0x53   :  { %325 = vmatprep.subr.bf16.mxu0 %v446_v0 }
  0x54   :  { %320 = vmatmul.mubr.msk.bf16.vlgmr.msra.gmra.mrb[0].mxu1 %vm155_vm2, %v138_v7 }
  0x56   :  { %326 = vmatpush3.bf16.msra.mxu0 %v343_v9 }
 0x123   :  { %v128_v10 = vpop.f32.mrb[0].mxu0 }
 0x124   :  { %135 = vst.msk [vmem:[#allocation2] sm:$0x3] %vm134_vm3, %v128_v10  ;;  %v313_v11 = vpop.f32.mrb[1].mxu0 }
 0x125   :  { %v131_v12 = vpop.f32.mrb[2].mxu0 }
 0x126   :  { %v314_v13 = vpop.f32.mrb[3].mxu0 }
 0x127   :  { %v193_v14 = vpop.f32.mrb[0].mxu1 }
 0x128   :  { %v321_v15 = vpop.f32.mrb[1].mxu1 }
 0x129   :  { %v196_v16 = vpop.f32.mrb[2].mxu1 }
 0x12a   :  { %v322_v18 = vpop.f32.mrb[3].mxu1 }
 0x12b   :  { %v136_v17 = vld [vmem:[#allocation2] sm:$0x3] }
 0x12c   :  { %v199_v19 = vadd.f32 %v193_v14, %v136_v17 }
 0x12e   :  { %201 = vst.msk [vmem:[#allocation2] sm:$0x3] %vm134_vm3, %v199_v19 }
 0x135   :  { %v205_v21 = vld [vmem:[#allocation2] sm:$0x3] }
 0x136   :  { %v213_v22 = vadd.f32 %v296_v20, %v205_v21 }
 0x138   :  { %344 = vtanh.f32 %v213_v22 }
 0x142   :  { %v345_v23 = vpop.eup %344 }
 0x143   :  { %v215_v24 = vpack.c.bf16 %v345_v23, %v345_v23 }
 0x145   :  { %328 = vmatmul.mubr.msk.bf16.vlgmr.msra.gmra.mrb[4].mxu0 %vm155_vm2, %v215_v24 }
 0x218   :  { %v276_v26 = vpop.f32.mrb[4].mxu0 }
 0x219   :  { %v277_v27 = vadd.f32 %v297_v25, %v276_v26  ;;  %v329_v28 = vpop.f32.mrb[5].mxu0 }
 0x21a   :  { %v279_v29 = vpop.f32.mrb[6].mxu0 }
 0x21b   :  { %v282_v30 = vpack.c.bf16 %v277_v27, %v277_v27  ;;  %v330_v31 = vpop.f32.mrb[7].mxu0 }
 0x21d   :  { %283 = vst [vmem:[%s563_s7] sm:$0x1] %v282_v30 }
 0x21e   :  { %288 = vsyncpa [#allocation4], 1 }
 0x21f   :  { %289 = vsyncpa [#allocation6], 1 }
 0x220   :  { %290 = vsyncpa [#allocation9], 1 }

</bundles_post_ra>
